<compile_context>
chip_gen: v5e
topology: v5e:2x2
jax: 0.10.0
libtpu: 0.0.40
codegen_flags: <defaults>
</compile_context>

<pallas_src>
import jax
import jax.numpy as jnp
import numpy as np
from jax.experimental import pallas as pl
from jax.experimental.pallas import tpu as pltpu


def _qens_kernel(s_ref, a_ref, w1s_ref, w1a_ref, b1_ref,
                 w2_ref, b2_ref, w3_ref, b3_ref, o_ref):
    # s_ref : (Bt, s_dim)   a_ref : (Bt, a_dim)
    # w1s   : (s_dim, E*H1) w1a   : (a_dim, E*H1)  b1: (1, E*H1)
    # w2    : (E*H1, E*H2) block-diagonal           b2: (1, E*H2)
    # w3    : (E*H2, E)    block-diagonal           b3: (1, E)
    # o_ref : (Bt, E)
    h = jnp.dot(s_ref[...], w1s_ref[...], preferred_element_type=jnp.float32)
    h = h + jnp.dot(a_ref[...], w1a_ref[...], preferred_element_type=jnp.float32)
    h = jnp.maximum(h + b1_ref[...], 0.0)                       # ReLU (VPU)
    h = jnp.dot(h, w2_ref[...], preferred_element_type=jnp.float32) + b2_ref[...]
    h = jnp.maximum(h, 0.0)                                     # ReLU (VPU)
    q = jnp.dot(h, w3_ref[...], preferred_element_type=jnp.float32) + b3_ref[...]
    o_ref[...] = q.astype(o_ref.dtype)


def pack_qensemble_params(params, s_dim):
    """Fold per-member params into lane-stacked / block-diagonal form.

    params: dict with stacked ensemble params:
        w1 (E, Din, H1), b1 (E, 1, H1),
        w2 (E, H1, H2),  b2 (E, 1, H2),
        w3 (E, H2, 1),   b3 (E, 1, 1)
    Done once outside the training hot path.
    """
    w1, b1 = params["w1"], params["b1"]
    w2, b2 = params["w2"], params["b2"]
    w3, b3 = params["w3"], params["b3"]
    E, din, H1 = w1.shape
    H2 = w2.shape[-1]

    # W1: (E, Din, H1) -> (Din, E*H1)   (column index = e*H1 + h)
    w1_f = jnp.transpose(w1, (1, 0, 2)).reshape(din, E * H1)
    w1s = w1_f[:s_dim]                       # (s_dim, E*H1)
    w1a = w1_f[s_dim:]                       # (a_dim, E*H1)
    b1_f = b1.reshape(1, E * H1)

    # W2: block-diagonal (E*H1, E*H2); W3: block-diagonal (E*H2, E)
    w2_bd = jax.scipy.linalg.block_diag(*[w2[e] for e in range(E)])
    b2_f = b2.reshape(1, E * H2)
    w3_bd = jax.scipy.linalg.block_diag(*[w3[e] for e in range(E)])
    b3_f = b3.reshape(1, E)

    return dict(w1s=w1s, w1a=w1a, b1=b1_f, w2=w2_bd, b2=b2_f, w3=w3_bd, b3=b3_f)


def qensemble_forward(state, action, packed):
    """Returns stacked Q values of shape (B, E) (lane-dense).

    state : (B, s_dim) f32,  action : (B, a_dim) f32
    packed: output of pack_qensemble_params().
    """
    state = state.astype(jnp.float32)
    action = action.astype(jnp.float32)
    B, s_dim = state.shape
    a_dim = action.shape[-1]

    w1s, w1a, b1 = packed["w1s"], packed["w1a"], packed["b1"]
    w2, b2 = packed["w2"], packed["b2"]
    w3, b3 = packed["w3"], packed["b3"]
    EH1 = w1s.shape[-1]
    EH2 = w2.shape[-1]
    E = w3.shape[-1]

    # Batch tile: one tile for small B, 512-row tiles (mult. of 8) for large B.
    bt = min(512, ((B + 7) // 8) * 8)
    Bp = ((B + bt - 1) // bt) * bt
    if Bp != B:
        pad = ((0, Bp - B), (0, 0))
        state = jnp.pad(state, pad)
        action = jnp.pad(action, pad)
    grid = (Bp // bt,)

    out = pl.pallas_call(
        _qens_kernel,
        out_shape=jax.ShapeDtypeStruct((Bp, E), jnp.float32),
        grid_spec=pltpu.PrefetchScalarGridSpec(
            num_scalar_prefetch=0,
            grid=grid,
            in_specs=[
                pl.BlockSpec((bt, s_dim), lambda i: (i, 0)),     # state tile
                pl.BlockSpec((bt, a_dim), lambda i: (i, 0)),     # action tile
                pl.BlockSpec((s_dim, EH1), lambda i: (0, 0)),    # W1_s (resident)
                pl.BlockSpec((a_dim, EH1), lambda i: (0, 0)),    # W1_a (resident)
                pl.BlockSpec((1, EH1), lambda i: (0, 0)),        # b1
                pl.BlockSpec((EH1, EH2), lambda i: (0, 0)),      # W2 block-diag
                pl.BlockSpec((1, EH2), lambda i: (0, 0)),        # b2
                pl.BlockSpec((EH2, E), lambda i: (0, 0)),        # W3 block-diag
                pl.BlockSpec((1, E), lambda i: (0, 0)),          # b3
            ],
            out_specs=pl.BlockSpec((bt, E), lambda i: (i, 0)),   # lane-dense out
        ),
        compiler_params=pltpu.CompilerParams(
            dimension_semantics=("parallel",)),                  # batch axis
    )(state, action, w1s, w1a, b1, w2, b2, w3, b3)

    return out[:B]


def qensemble_forward_tuple(state, action, packed):
    """PyTorch-parity wrapper: tuple of E arrays, each (B, 1)."""
    q = qensemble_forward(state, action, packed)
    return tuple(q[:, e:e + 1] for e in range(q.shape[-1]))


def qensemble_forward_ref(state, action, params):
    """Pure-JAX reference (mirrors the PyTorch loop over ensemble members)."""
    x = jnp.concatenate([state, action], axis=-1).astype(jnp.float32)
    outs = []
    for e in range(params["w1"].shape[0]):
        h = jnp.maximum(x @ params["w1"][e] + params["b1"][e], 0.0)
        h = jnp.maximum(h @ params["w2"][e] + params["b2"][e], 0.0)
        outs.append(h @ params["w3"][e] + params["b3"][e])
    return outs


def init_qensemble_params(key, ensemble_size, s_dim, a_dim, hiddens):
    """Deterministic He-normal-ish init of stacked ensemble MLP params."""
    dims = [s_dim + a_dim] + list(hiddens) + [1]
    params = {}
    keys = jax.random.split(key, len(dims) - 1)
    for li, (din, dout) in enumerate(zip(dims[:-1], dims[1:])):
        std = np.sqrt(2.0 / din)  # kaiming_normal_ fan_in, bias = 0
        w = jax.random.normal(keys[li], (ensemble_size, din, dout), jnp.float32) * std
        b = jnp.zeros((ensemble_size, 1, dout), jnp.float32)
        params[f"w{li + 1}"] = w
        params[f"b{li + 1}"] = b
    return params


if __name__ == "__main__":
    key = jax.random.PRNGKey(0)
    k_s, k_a, k_p = jax.random.split(key, 3)

    ensemble_size = 4
    s_dim, a_dim = 12, 4
    hiddens = [32, 32]
    batch = 8

    state = jax.random.normal(k_s, (batch, s_dim), jnp.float32)
    action = jax.random.normal(k_a, (batch, a_dim), jnp.float32)
    params = init_qensemble_params(k_p, ensemble_size, s_dim, a_dim, hiddens)

    packed = pack_qensemble_params(params, s_dim)  # one-time fold, outside hot path

    # Hot path: single kernel call, stacked (B, E) output.
    q_stacked = jax.block_until_ready(qensemble_forward(state, action, packed))
    assert q_stacked.shape == (batch, ensemble_size)

    # Reference.
    q_ref = qensemble_forward_ref(state, action, params)
    q_ref_stacked = jnp.concatenate(q_ref, axis=-1)
    np.testing.assert_allclose(np.asarray(q_stacked), np.asarray(q_ref_stacked),
                               rtol=1e-5, atol=1e-5)

    # PyTorch-parity tuple output.
    q_tuple = qensemble_forward_tuple(state, action, packed)
    q_tuple = jax.block_until_ready(q_tuple)
    assert len(q_tuple) == ensemble_size
    for qp, qr in zip(q_tuple, q_ref):
        assert qp.shape == (batch, 1)
        np.testing.assert_allclose(np.asarray(qp), np.asarray(qr),
                                   rtol=1e-5, atol=1e-5)

    print("KERNEL_OK")
</pallas_src>

<mosaic_0001>
module attributes {stable_mosaic.version = 11 : i64} {
  func.func @_qens_kernel(%arg0: i32, %arg1: memref<8x12xf32, #tpu.memory_space<vmem>>, %arg2: memref<8x4xf32, #tpu.memory_space<vmem>>, %arg3: memref<12x128xf32, #tpu.memory_space<vmem>>, %arg4: memref<4x128xf32, #tpu.memory_space<vmem>>, %arg5: memref<1x128xf32, #tpu.memory_space<vmem>>, %arg6: memref<128x128xf32, #tpu.memory_space<vmem>>, %arg7: memref<1x128xf32, #tpu.memory_space<vmem>>, %arg8: memref<128x4xf32, #tpu.memory_space<vmem>>, %arg9: memref<1x4xf32, #tpu.memory_space<vmem>>, %arg10: memref<8x4xf32, #tpu.memory_space<vmem>>) attributes {dimension_semantics = [#tpu.dimension_semantics<parallel>], iteration_bounds = array<i64: 1>, scalar_prefetch = 0 : i64, scratch_operands = 0 : i64, tpu.core_type = #tpu.core_type<tc>, window_params = [{transform_indices = @transform_0, window_bounds = array<i64: 8, 12>}, {transform_indices = @transform_1, window_bounds = array<i64: 8, 4>}, {pipeline_mode = #tpu.pipeline_mode<synchronous>, transform_indices = @transform_2, window_bounds = array<i64: 12, 128>}, {pipeline_mode = #tpu.pipeline_mode<synchronous>, transform_indices = @transform_3, window_bounds = array<i64: 4, 128>}, {pipeline_mode = #tpu.pipeline_mode<synchronous>, transform_indices = @transform_4, window_bounds = array<i64: 1, 128>}, {pipeline_mode = #tpu.pipeline_mode<synchronous>, transform_indices = @transform_5, window_bounds = array<i64: 128, 128>}, {pipeline_mode = #tpu.pipeline_mode<synchronous>, transform_indices = @transform_6, window_bounds = array<i64: 1, 128>}, {pipeline_mode = #tpu.pipeline_mode<synchronous>, transform_indices = @transform_7, window_bounds = array<i64: 128, 4>}, {pipeline_mode = #tpu.pipeline_mode<synchronous>, transform_indices = @transform_8, window_bounds = array<i64: 1, 4>}, {transform_indices = @transform_9, window_bounds = array<i64: 8, 4>}]} {
    %c0 = arith.constant 0 : index
    %c0_0 = arith.constant 0 : index
    %0 = vector.load %arg1[%c0, %c0_0] : memref<8x12xf32, #tpu.memory_space<vmem>>, vector<8x12xf32>
    %c0_1 = arith.constant 0 : index
    %c0_2 = arith.constant 0 : index
    %1 = vector.load %arg3[%c0_1, %c0_2] : memref<12x128xf32, #tpu.memory_space<vmem>>, vector<12x128xf32>
    %cst = arith.constant dense<0.000000e+00> : vector<8x128xf32>
    %2 = tpu.matmul %0, %1, %cst {dimension_numbers = #tpu.dot_dimension_numbers<[1], [0], [0], [1], [0, 0, 1, 1], [], []>} : vector<8x12xf32>, vector<12x128xf32>, vector<8x128xf32> -> vector<8x128xf32>
    %c0_3 = arith.constant 0 : index
    %c0_4 = arith.constant 0 : index
    %3 = vector.load %arg2[%c0_3, %c0_4] : memref<8x4xf32, #tpu.memory_space<vmem>>, vector<8x4xf32>
    %c0_5 = arith.constant 0 : index
    %c0_6 = arith.constant 0 : index
    %4 = vector.load %arg4[%c0_5, %c0_6] : memref<4x128xf32, #tpu.memory_space<vmem>>, vector<4x128xf32>
    %cst_7 = arith.constant dense<0.000000e+00> : vector<8x128xf32>
    %5 = tpu.matmul %3, %4, %cst_7 {dimension_numbers = #tpu.dot_dimension_numbers<[1], [0], [0], [1], [0, 0, 1, 1], [], []>} : vector<8x4xf32>, vector<4x128xf32>, vector<8x128xf32> -> vector<8x128xf32>
    %6 = arith.addf %2, %5 : vector<8x128xf32>
    %c0_8 = arith.constant 0 : index
    %c0_9 = arith.constant 0 : index
    %7 = vector.load %arg5[%c0_8, %c0_9] : memref<1x128xf32, #tpu.memory_space<vmem>>, vector<1x128xf32>
    %8 = vector.broadcast %7 : vector<1x128xf32> to vector<8x128xf32>
    %9 = arith.addf %6, %8 : vector<8x128xf32>
    %cst_10 = arith.constant 0.000000e+00 : f32
    %10 = vector.broadcast %cst_10 : f32 to vector<8x128xf32>
    %11 = arith.maximumf %9, %10 : vector<8x128xf32>
    %c0_11 = arith.constant 0 : index
    %c0_12 = arith.constant 0 : index
    %12 = vector.load %arg6[%c0_11, %c0_12] : memref<128x128xf32, #tpu.memory_space<vmem>>, vector<128x128xf32>
    %cst_13 = arith.constant dense<0.000000e+00> : vector<8x128xf32>
    %13 = tpu.matmul %11, %12, %cst_13 {dimension_numbers = #tpu.dot_dimension_numbers<[1], [0], [0], [1], [0, 0, 1, 1], [], []>} : vector<8x128xf32>, vector<128x128xf32>, vector<8x128xf32> -> vector<8x128xf32>
    %c0_14 = arith.constant 0 : index
    %c0_15 = arith.constant 0 : index
    %14 = vector.load %arg7[%c0_14, %c0_15] : memref<1x128xf32, #tpu.memory_space<vmem>>, vector<1x128xf32>
    %15 = vector.broadcast %14 : vector<1x128xf32> to vector<8x128xf32>
    %16 = arith.addf %13, %15 : vector<8x128xf32>
    %cst_16 = arith.constant 0.000000e+00 : f32
    %17 = vector.broadcast %cst_16 : f32 to vector<8x128xf32>
    %18 = arith.maximumf %16, %17 : vector<8x128xf32>
    %c0_17 = arith.constant 0 : index
    %c0_18 = arith.constant 0 : index
    %19 = vector.load %arg8[%c0_17, %c0_18] : memref<128x4xf32, #tpu.memory_space<vmem>>, vector<128x4xf32>
    %cst_19 = arith.constant dense<0.000000e+00> : vector<8x4xf32>
    %20 = tpu.matmul %18, %19, %cst_19 {dimension_numbers = #tpu.dot_dimension_numbers<[1], [0], [0], [1], [0, 0, 1, 1], [], []>} : vector<8x128xf32>, vector<128x4xf32>, vector<8x4xf32> -> vector<8x4xf32>
    %c0_20 = arith.constant 0 : index
    %c0_21 = arith.constant 0 : index
    %21 = vector.load %arg9[%c0_20, %c0_21] : memref<1x4xf32, #tpu.memory_space<vmem>>, vector<1x4xf32>
    %22 = vector.broadcast %21 : vector<1x4xf32> to vector<8x4xf32>
    %23 = arith.addf %20, %22 : vector<8x4xf32>
    %c0_22 = arith.constant 0 : index
    %c0_23 = arith.constant 0 : index
    %24 = vector.load %arg10[%c0_22, %c0_23] : memref<8x4xf32, #tpu.memory_space<vmem>>, vector<8x4xf32>
    tpu.vector_store %arg10[%c0_22, %c0_23], %23 {strides = array<i32>} : memref<8x4xf32, #tpu.memory_space<vmem>>, vector<8x4xf32>,
    return
  }
  func.func @transform_0(%arg0: i32) -> (i32, i32) {
    %c0_i32 = arith.constant 0 : i32
    %c0_i32_0 = arith.constant 0 : i32
    return %arg0, %c0_i32 : i32, i32
  }
  func.func @transform_1(%arg0: i32) -> (i32, i32) {
    %c0_i32 = arith.constant 0 : i32
    %c0_i32_0 = arith.constant 0 : i32
    return %arg0, %c0_i32 : i32, i32
  }
  func.func @transform_2(%arg0: i32) -> (i32, i32) {
    %c0_i32 = arith.constant 0 : i32
    %c0_i32_0 = arith.constant 0 : i32
    %c0_i32_1 = arith.constant 0 : i32
    return %c0_i32, %c0_i32_0 : i32, i32
  }
  func.func @transform_3(%arg0: i32) -> (i32, i32) {
    %c0_i32 = arith.constant 0 : i32
    %c0_i32_0 = arith.constant 0 : i32
    %c0_i32_1 = arith.constant 0 : i32
    return %c0_i32, %c0_i32_0 : i32, i32
  }
  func.func @transform_4(%arg0: i32) -> (i32, i32) {
    %c0_i32 = arith.constant 0 : i32
    %c0_i32_0 = arith.constant 0 : i32
    %c0_i32_1 = arith.constant 0 : i32
    return %c0_i32, %c0_i32_0 : i32, i32
  }
  func.func @transform_5(%arg0: i32) -> (i32, i32) {
    %c0_i32 = arith.constant 0 : i32
    %c0_i32_0 = arith.constant 0 : i32
    %c0_i32_1 = arith.constant 0 : i32
    return %c0_i32, %c0_i32_0 : i32, i32
  }
  func.func @transform_6(%arg0: i32) -> (i32, i32) {
    %c0_i32 = arith.constant 0 : i32
    %c0_i32_0 = arith.constant 0 : i32
    %c0_i32_1 = arith.constant 0 : i32
    return %c0_i32, %c0_i32_0 : i32, i32
  }
  func.func @transform_7(%arg0: i32) -> (i32, i32) {
    %c0_i32 = arith.constant 0 : i32
    %c0_i32_0 = arith.constant 0 : i32
    %c0_i32_1 = arith.constant 0 : i32
    return %c0_i32, %c0_i32_0 : i32, i32
  }
  func.func @transform_8(%arg0: i32) -> (i32, i32) {
    %c0_i32 = arith.constant 0 : i32
    %c0_i32_0 = arith.constant 0 : i32
    %c0_i32_1 = arith.constant 0 : i32
    return %c0_i32, %c0_i32_0 : i32, i32
  }
  func.func @transform_9(%arg0: i32) -> (i32, i32) {
    %c0_i32 = arith.constant 0 : i32
    %c0_i32_0 = arith.constant 0 : i32
    return %arg0, %c0_i32 : i32, i32
  }
}

</mosaic_0001>

<bundles_post_ra>
// kernel: tpu_custom_call.1
= control target key start
LH: loop header
LB: loop body
LE: loop exit
PB: predicated region body
PF: predicated region fallthrough
CT: control target
= control target key end

     0   :  { %14 = vsyncpa [#allocation3], 0  ;;  %s237_s12 = smov [#allocation2]   ;;  %s238_s14 = smov 128   ;;  %s412_s0 = inlined_call_operand.vmem [shape: f32[8,12], index: 0, kind: input, shape index: {}]   ;;  %s413_s1 = inlined_call_operand.vmem [shape: f32[8,4], index: 1, kind: input, shape index: {}]   ;;  %s414_s2 = inlined_call_operand.hbm [shape: f32[12,128], index: 2, kind: input, shape index: {}]   ;;  %s415_s3 = inlined_call_operand.vmem [shape: f32[4,128], index: 3, kind: input, shape index: {}]   ;;  %s416_s4 = inlined_call_operand.vmem [shape: f32[1,128], index: 4, kind: input, shape index: {}]   ;;  %s417_s5 = inlined_call_operand.vmem [shape: f32[128,128], index: 5, kind: input, shape index: {}]   ;;  %s418_s6 = inlined_call_operand.vmem [shape: f32[1,128], index: 6, kind: input, shape index: {}]   ;;  %s419_s7 = inlined_call_operand.vmem [shape: f32[128,4], index: 7, kind: input, shape index: {}]   ;;  %s420_s8 = inlined_call_operand.vmem [shape: f32[1,4], index: 8, kind: input, shape index: {}]   ;;  %s421_s9 = inlined_call_operand.vmem [shape: f32[8,4], index: 9, kind: output, shape index: {}]  }
   0x1   :  { %s23_s11 = sshll.u32 %s414_s2, 4  ;;  %s25_s13 = sshll.u32 %s237_s12, 4  ;;  %s24_s11 = int_to_ptr.hbm [resolvable:$true] %s23_s11  ;;  %s26_s13 = int_to_ptr.vmem [resolvable:$true] %s25_s13 }
   0x2   :  { %s239_s15 = smov 8  }
   0x3   :  { %31 = dma.hbm_to_vmem [thread:$0]  %s24_s11, 256, %s26_s13, [#allocation3], %s238_s14, %s238_s14, %s239_s15  }
   0x4   :  { %235 = dma.done.wait [#allocation3], 256  }
   0x5   :  { %236 = vsyncadd [#allocation3], 4294967040  ;;  %vm57_vm0 = vcmask 1043456   ;;  %vm53_vm1 = vcmask 31744   ;;  %v50_v0 = vld [vmem:[#allocation2 + $0x8] sm:$0xf] }
   0x6   :  { %v52_v1 = vld [vmem:[%s415_s3] sm:$0xf]  ;;  %203 = vmatpush.msk.msra.mxu1 %vm57_vm0, %v50_v0  ;;  %vm81_vm2 = vcmask 97280   ;;  %v129_v5 = vld [vmem:[%s417_s5 + $0x78] sm:$0xff]  ;;  %v128_v6 = vld [vmem:[%s417_s5 + $0x70] sm:$0xff] }
   0x7   :  { %v49_v2 = vld [vmem:[#allocation2] sm:$0xff]  ;;  %201 = vmatpush.msk.msra.mxu0 %vm57_vm0, %v52_v1  ;;  %134 = vmatpush.msra.mxu2 %v129_v5  ;;  %v127_v7 = vld [vmem:[%s417_s5 + $0x68] sm:$0xff]  ;;  %v125_v9 = vld [vmem:[%s417_s5 + $0x58] sm:$0xff] }
   0x8   :  { %v51_v3 = vld [vmem:[%s413_s1] sm:$0xff]  ;;  %103 = vmatpush.msra.mxu1 %v49_v2  ;;  %v124_v10 = vld [vmem:[%s417_s5 + $0x50] sm:$0xff]  ;;  %v123_v11 = vld [vmem:[%s417_s5 + $0x48] sm:$0xff] }
   0x9   :  { %v48_v4 = vld [vmem:[%s412_s0] sm:$0xff]  ;;  %202 = vmatmul.msk.f32.vlgmr.msra.gmra.mxu0 %vm53_vm1, %v51_v3  ;;  %135 = vmatpush.msra.mxu2 %v128_v6  ;;  %v121_v13 = vld [vmem:[%s417_s5 + $0x38] sm:$0xff]  ;;  %v120_v14 = vld [vmem:[%s417_s5 + $0x30] sm:$0xff] }
   0xa   :  { %204 = vmatmul.msk.f32.vlgmr.msra.gmra.mxu1 %vm81_vm2, %v48_v4  ;;  %v126_v8 = vld [vmem:[%s417_s5 + $0x60] sm:$0xff]  ;;  %v119_v15 = vld [vmem:[%s417_s5 + $0x28] sm:$0xff]  ;;  %v117_v17 = vld [vmem:[%s417_s5 + $0x18] sm:$0xff] }
   0xb   :  { %136 = vmatpush.msra.mxu2 %v127_v7  ;;  %v122_v12 = vld [vmem:[%s417_s5 + $0x40] sm:$0xff]  ;;  %v116_v18 = vld [vmem:[%s417_s5 + $0x10] sm:$0xff]  ;;  %v115_v19 = vld [vmem:[%s417_s5 + $0x8] sm:$0xff] }
   0xc   :  { %v118_v16 = vld [vmem:[%s417_s5 + $0x20] sm:$0xff]  ;;  %v170_v21 = vld [vmem:[%s419_s7 + $0x78] sm:$0xff]  ;;  %v169_v22 = vld [vmem:[%s419_s7 + $0x70] sm:$0xff] }
   0xd   :  { %137 = vmatpush.msra.mxu2 %v126_v8  ;;  %v114_v20 = vld [vmem:[%s417_s5] sm:$0xff]  ;;  %175 = vmatpush.msra.mxu3 %v170_v21  ;;  %v168_v23 = vld [vmem:[%s419_s7 + $0x68] sm:$0xff]  ;;  %v166_v25 = vld [vmem:[%s419_s7 + $0x58] sm:$0xff] }
   0xe   :  { %v167_v24 = vld [vmem:[%s419_s7 + $0x60] sm:$0xff]  ;;  %v165_v26 = vld [vmem:[%s419_s7 + $0x50] sm:$0xff]  ;;  %v164_v27 = vld [vmem:[%s419_s7 + $0x48] sm:$0xff] }
   0xf   :  { %138 = vmatpush.msra.mxu2 %v125_v9  ;;  %176 = vmatpush.msra.mxu3 %v169_v22  ;;  %v163_v28 = vld [vmem:[%s419_s7 + $0x40] sm:$0xff]  ;;  %v162_v29 = vld [vmem:[%s419_s7 + $0x38] sm:$0xff]  ;;  %v161_v30 = vld [vmem:[%s419_s7 + $0x30] sm:$0xff] }
  0x10   :  { %v160_v31 = vld [vmem:[%s419_s7 + $0x28] sm:$0xff]  ;;  %v159_v32 = vld [vmem:[%s419_s7 + $0x20] sm:$0xff]  ;;  %v158_v33 = vld [vmem:[%s419_s7 + $0x18] sm:$0xff] }
  0x11   :  { %139 = vmatpush.msra.mxu2 %v124_v10  ;;  %177 = vmatpush.msra.mxu3 %v168_v23  ;;  %v208_v35 = vld [vmem:[%s416_s4] ss:$0 sm:$0xff]  ;;  %v157_v40 = vld [vmem:[%s419_s7 + $0x10] sm:$0xff]  ;;  %v156_v41 = vld [vmem:[%s419_s7 + $0x8] sm:$0xff] }
  0x12   :  { %v155_v42 = vld [vmem:[%s419_s7] sm:$0xff] }
  0x13   :  { %140 = vmatpush.msra.mxu2 %v123_v11  ;;  %178 = vmatpush.msra.mxu3 %v167_v24  ;;  %v209_v43 = vld [vmem:[%s418_s6] ss:$0 sm:$0xff] }
  0x14   :  { %v210_v47 = vld [vmem:[%s420_s8] ss:$0 sm:$0xff] }
  0x15   :  { %141 = vmatpush.msra.mxu2 %v122_v12  ;;  %179 = vmatpush.msra.mxu3 %v166_v25 }
  0x17   :  { %142 = vmatpush.msra.mxu2 %v121_v13  ;;  %180 = vmatpush.msra.mxu3 %v165_v26 }
  0x19   :  { %143 = vmatpush.msra.mxu2 %v120_v14  ;;  %181 = vmatpush.msra.mxu3 %v164_v27 }
  0x1b   :  { %144 = vmatpush.msra.mxu2 %v119_v15  ;;  %182 = vmatpush.msra.mxu3 %v163_v28 }
  0x1d   :  { %145 = vmatpush.msra.mxu2 %v118_v16  ;;  %183 = vmatpush.msra.mxu3 %v162_v29 }
  0x1f   :  { %146 = vmatpush.msra.mxu2 %v117_v17  ;;  %184 = vmatpush.msra.mxu3 %v161_v30 }
  0x21   :  { %147 = vmatpush.msra.mxu2 %v116_v18  ;;  %185 = vmatpush.msra.mxu3 %v160_v31 }
  0x23   :  { %148 = vmatpush.msra.mxu2 %v115_v19  ;;  %186 = vmatpush.msra.mxu3 %v159_v32 }
  0x25   :  { %149 = vmatpush.msra.mxu2 %v114_v20  ;;  %187 = vmatpush.msra.mxu3 %v158_v33 }
  0x27   :  { %188 = vmatpush.msra.mxu3 %v157_v40 }
  0x29   :  { %189 = vmatpush.msra.mxu3 %v156_v41 }
  0x2b   :  { %190 = vmatpush.msra.mxu3 %v155_v42 }
  0x86   :  { %v78_v34 = vpop.f32.mrf.mxu0 }
  0x87   :  { %v105_v36 = vpop.f32.mrf.mxu1 }
  0x88   :  { %v106_v37 = vadd.f32 %v105_v36, %v78_v34 }
  0x8a   :  { %v112_v38 = vadd.f32 %v208_v35, %v106_v37 }
  0x8c   :  { %v113_v39 = vmax.f32 %v112_v38, 0.0 }
  0x8e   :  { %150 = vmatmul.f32.vlgmr.msra.gmra.mxu2 %v113_v39 }
 0x111   :  { %v151_v44 = vpop.f32.mrf.mxu2 }
 0x112   :  { %v152_v45 = vadd.f32 %v209_v43, %v151_v44 }
 0x114   :  { %v154_v46 = vmax.f32 %v152_v45, 0.0 }
 0x116   :  { %191 = vmatmul.f32.vlgmr.msra.gmra.mxu3 %v154_v46 }
 0x199   :  { %v192_v48 = vpop.f32.mrf.mxu3 }
 0x19a   :  { %v193_v49 = vadd.f32 %v210_v47, %v192_v48 }
 0x19c   :  { %195 = vst.msk [vmem:[%s421_s9] sm:$0xff] %vm53_vm1, %v193_v49 }
 0x19d   :  { %200 = vsyncpa [#allocation3], 1 }

</bundles_post_ra>
